<compile_context>
chip_gen: v7x
topology: tpu7x:2x2x1
jax: 0.10.0
libtpu: 0.0.40
codegen_flags: <defaults>
</compile_context>

<pallas_src>
import jax
import jax.numpy as jnp
from jax.experimental import pallas as pl
from jax.experimental.pallas import tpu as pltpu


IGNORE_INDEX = -100  # PyTorch NLLLoss / CrossEntropyLoss default


def nll_ce_kernel(x_ref, t_ref, out_ref):
    # x_ref:   (1, C, R, 128) logits (native dtype)
    # t_ref:   (1, R, 128)    int32 labels
    # out_ref: (1, 1, 2, 128) f32: row 0 = sum of masked NLL per lane,
    #                              row 1 = count of valid pixels per lane
    t = t_ref[0]                           # (R, 128)
    num_classes = x_ref.shape[1]

    # Pass 1: running max over classes (full (R,128) vreg VALU ops, unrolled).
    m = x_ref[0, 0].astype(jnp.float32)
    for c in range(1, num_classes):
        m = jnp.maximum(m, x_ref[0, c].astype(jnp.float32))

    # Pass 2: sum-exp and the target-class pick share xm = x - m.
    sumexp = jnp.zeros_like(m)
    picked_minus_m = jnp.zeros_like(m)
    for c in range(num_classes):
        xm = x_ref[0, c].astype(jnp.float32) - m
        sumexp = sumexp + jnp.exp(xm)
        picked_minus_m = picked_minus_m + jnp.where(t == c, xm, 0.0)

    nll = jnp.log(sumexp) - picked_minus_m          # (R, 128) per-pixel NLL

    # ignore_index (-100), padded pixels, and any out-of-range label are excluded.
    valid = (t >= 0) & (t < num_classes)
    nll_part = jnp.sum(jnp.where(valid, nll, 0.0), axis=0, keepdims=True)   # (1,128)
    cnt_part = jnp.sum(valid.astype(jnp.float32), axis=0, keepdims=True)    # (1,128)
    out_ref[...] = jnp.concatenate([nll_part, cnt_part], axis=0).reshape(out_ref.shape)


def _pick_row_tile(sr, num_classes, itemsize, budget_bytes=16 * 1024 * 1024):
    """Rows-of-128-lanes per tile.  Budget covers the double-buffered logits block,
    double-buffered targets and ~6 f32 (R,128) temporaries -> safe on v5e/v6e/v7x."""
    bytes_per_row = 2 * num_classes * 128 * itemsize + 2 * 128 * 4 + 6 * 128 * 4
    r_max = max(8, budget_bytes // bytes_per_row)
    if sr <= r_max:
        return sr                       # whole spatial extent in one tile per batch elem
    return max(8, (r_max // 8) * 8)     # multiple of 8 sublanes


@jax.jit
def nll_ce_loss(score, target):
    """score: (N, C, H, W) float logits, target: (N, H, W) int labels -> scalar loss.

    Equals NLLLoss(LogSoftmax(score, dim=1), target) + CrossEntropyLoss(score, target)
    with weight=None.
    """
    # TODO(synk): per-class `weight` rescaling (weight argument) not implemented.
    N, C, H, W = score.shape
    S = H * W

    x = score.reshape(N, C, S)                 # free reshape (NCHW contiguity preserved)
    t = target.reshape(N, S).astype(jnp.int32)

    sr_raw = -(-S // 128)                      # spatial rows of 128 lanes (ceil)
    R = _pick_row_tile(sr_raw, C, x.dtype.itemsize)
    num_tiles = -(-sr_raw // R)
    SR = num_tiles * R
    S_pad = SR * 128

    pad = S_pad - S
    if pad:
        # Padded pixels get target = ignore_index -> contribute 0 and are not counted.
        x = jnp.pad(x, ((0, 0), (0, 0), (0, pad)))
        t = jnp.pad(t, ((0, 0), (0, pad)), constant_values=IGNORE_INDEX)

    x = x.reshape(N, C, SR, 128)
    t = t.reshape(N, SR, 128)

    partials = pl.pallas_call(
        nll_ce_kernel,
        out_shape=jax.ShapeDtypeStruct((N, num_tiles, 2, 128), jnp.float32),
        grid_spec=pltpu.PrefetchScalarGridSpec(
            num_scalar_prefetch=0,
            grid=(N, num_tiles),
            in_specs=[
                pl.BlockSpec((1, C, R, 128), lambda n, s: (n, 0, s, 0)),  # logits tile
                pl.BlockSpec((1, R, 128), lambda n, s: (n, s, 0)),        # target tile
            ],
            out_specs=pl.BlockSpec((1, 1, 2, 128), lambda n, s: (n, s, 0, 0)),
        ),
        compiler_params=pltpu.CompilerParams(
            dimension_semantics=("parallel", "parallel"),
            vmem_limit_bytes=32 * 1024 * 1024,
        ),
    )(x, t)

    # Tiny final reduction over (N, num_tiles, 128) partials stays in XLA.
    nll_sum = jnp.sum(partials[:, :, 0, :])
    count = jnp.sum(partials[:, :, 1, :])
    return 2.0 * nll_sum / jnp.maximum(count, 1.0)


def _ref_loss(score, target):
    """Pure-JAX reference: 2 * mean NLL over non-ignored pixels."""
    N, C, H, W = score.shape
    logp = jax.nn.log_softmax(score.astype(jnp.float32), axis=1)
    valid = (target >= 0) & (target < C)
    t_safe = jnp.where(valid, target, 0)
    picked = jnp.take_along_axis(logp, t_safe[:, None, :, :], axis=1)[:, 0]
    nll = jnp.where(valid, -picked, 0.0)
    denom = jnp.maximum(jnp.sum(valid.astype(jnp.float32)), 1.0)
    return 2.0 * jnp.sum(nll) / denom


if __name__ == "__main__":
    key = jax.random.PRNGKey(0)

    # Case 1: small, 128-aligned spatial extent, no ignored labels.
    k1, k2, k3, k4 = jax.random.split(key, 4)
    N, C, H, W = 2, 4, 16, 16
    score = jax.random.normal(k1, (N, C, H, W), dtype=jnp.float32)
    target = jax.random.randint(k2, (N, H, W), 0, C, dtype=jnp.int32)
    loss = nll_ce_loss(score, target)
    jax.block_until_ready(loss)
    ref = _ref_loss(score, target)
    assert jnp.allclose(loss, ref, atol=1e-5, rtol=1e-5), (loss, ref)

    # Case 2: unaligned spatial extent (exercises the padding path) + ignored labels.
    N2, C2, H2, W2 = 2, 6, 10, 13
    score2 = jax.random.normal(k3, (N2, C2, H2, W2), dtype=jnp.float32)
    target2 = jax.random.randint(k4, (N2, H2, W2), 0, C2, dtype=jnp.int32)
    target2 = jnp.where(target2 == 0, IGNORE_INDEX, target2)  # some ignored pixels
    loss2 = nll_ce_loss(score2, target2)
    jax.block_until_ready(loss2)
    ref2 = _ref_loss(score2, target2)
    assert jnp.allclose(loss2, ref2, atol=1e-5, rtol=1e-5), (loss2, ref2)

    print("KERNEL_OK")
</pallas_src>

<mosaic_0001>
module attributes {stable_mosaic.version = 11 : i64} {
  func.func @nll_ce_kernel(%arg0: i32, %arg1: i32, %arg2: memref<1x4x2x128xf32, #tpu.memory_space<vmem>>, %arg3: memref<1x2x128xi32, #tpu.memory_space<vmem>>, %arg4: memref<1x1x2x128xf32, #tpu.memory_space<vmem>>) attributes {dimension_semantics = [#tpu.dimension_semantics<parallel>, #tpu.dimension_semantics<parallel>], iteration_bounds = array<i64: 2, 1>, scalar_prefetch = 0 : i64, scratch_operands = 0 : i64, tpu.core_type = #tpu.core_type<tc>, window_params = [{transform_indices = @transform_0, window_bounds = array<i64: 1, 4, 2, 128>}, {transform_indices = @transform_1, window_bounds = array<i64: 1, 2, 128>}, {transform_indices = @transform_2, window_bounds = array<i64: 1, 1, 2, 128>}]} {
    %c0 = arith.constant 0 : index
    %c0_0 = arith.constant 0 : index
    %c0_1 = arith.constant 0 : index
    %0 = vector.load %arg3[%c0, %c0_0, %c0_1] : memref<1x2x128xi32, #tpu.memory_space<vmem>>, vector<1x2x128xi32>
    %1 = vector.shape_cast %0 : vector<1x2x128xi32> to vector<2x128xi32>
    %c0_2 = arith.constant 0 : index
    %c0_3 = arith.constant 0 : index
    %c0_4 = arith.constant 0 : index
    %c0_5 = arith.constant 0 : index
    %2 = vector.load %arg2[%c0_2, %c0_3, %c0_4, %c0_5] : memref<1x4x2x128xf32, #tpu.memory_space<vmem>>, vector<1x1x2x128xf32>
    %3 = vector.shape_cast %2 : vector<1x1x2x128xf32> to vector<2x128xf32>
    %c0_6 = arith.constant 0 : index
    %c1 = arith.constant 1 : index
    %c0_7 = arith.constant 0 : index
    %c0_8 = arith.constant 0 : index
    %4 = vector.load %arg2[%c0_6, %c1, %c0_7, %c0_8] : memref<1x4x2x128xf32, #tpu.memory_space<vmem>>, vector<1x1x2x128xf32>
    %5 = vector.shape_cast %4 : vector<1x1x2x128xf32> to vector<2x128xf32>
    %6 = arith.maximumf %3, %5 : vector<2x128xf32>
    %c0_9 = arith.constant 0 : index
    %c2 = arith.constant 2 : index
    %c0_10 = arith.constant 0 : index
    %c0_11 = arith.constant 0 : index
    %7 = vector.load %arg2[%c0_9, %c2, %c0_10, %c0_11] : memref<1x4x2x128xf32, #tpu.memory_space<vmem>>, vector<1x1x2x128xf32>
    %8 = vector.shape_cast %7 : vector<1x1x2x128xf32> to vector<2x128xf32>
    %9 = arith.maximumf %6, %8 : vector<2x128xf32>
    %c0_12 = arith.constant 0 : index
    %c3 = arith.constant 3 : index
    %c0_13 = arith.constant 0 : index
    %c0_14 = arith.constant 0 : index
    %10 = vector.load %arg2[%c0_12, %c3, %c0_13, %c0_14] : memref<1x4x2x128xf32, #tpu.memory_space<vmem>>, vector<1x1x2x128xf32>
    %11 = vector.shape_cast %10 : vector<1x1x2x128xf32> to vector<2x128xf32>
    %12 = arith.maximumf %9, %11 : vector<2x128xf32>
    %cst = arith.constant 0.000000e+00 : f32
    %13 = vector.broadcast %cst : f32 to vector<2x128xf32>
    %cst_15 = arith.constant 0.000000e+00 : f32
    %14 = vector.broadcast %cst_15 : f32 to vector<2x128xf32>
    %c0_16 = arith.constant 0 : index
    %c0_17 = arith.constant 0 : index
    %c0_18 = arith.constant 0 : index
    %c0_19 = arith.constant 0 : index
    %15 = vector.load %arg2[%c0_16, %c0_17, %c0_18, %c0_19] : memref<1x4x2x128xf32, #tpu.memory_space<vmem>>, vector<1x1x2x128xf32>
    %16 = vector.shape_cast %15 : vector<1x1x2x128xf32> to vector<2x128xf32>
    %17 = arith.subf %16, %12 : vector<2x128xf32>
    %18 = math.exp %17 : vector<2x128xf32>
    %19 = arith.addf %13, %18 : vector<2x128xf32>
    %c0_i32 = arith.constant 0 : i32
    %20 = vector.broadcast %c0_i32 : i32 to vector<2x128xi32>
    %21 = arith.cmpi eq, %1, %20 : vector<2x128xi32>
    %cst_20 = arith.constant 0.000000e+00 : f32
    %22 = vector.broadcast %cst_20 : f32 to vector<2x128xf32>
    %23 = arith.select %21, %17, %22 : vector<2x128xi1>, vector<2x128xf32>
    %24 = arith.addf %14, %23 : vector<2x128xf32>
    %c0_21 = arith.constant 0 : index
    %c1_22 = arith.constant 1 : index
    %c0_23 = arith.constant 0 : index
    %c0_24 = arith.constant 0 : index
    %25 = vector.load %arg2[%c0_21, %c1_22, %c0_23, %c0_24] : memref<1x4x2x128xf32, #tpu.memory_space<vmem>>, vector<1x1x2x128xf32>
    %26 = vector.shape_cast %25 : vector<1x1x2x128xf32> to vector<2x128xf32>
    %27 = arith.subf %26, %12 : vector<2x128xf32>
    %28 = math.exp %27 : vector<2x128xf32>
    %29 = arith.addf %19, %28 : vector<2x128xf32>
    %c1_i32 = arith.constant 1 : i32
    %30 = vector.broadcast %c1_i32 : i32 to vector<2x128xi32>
    %31 = arith.cmpi eq, %1, %30 : vector<2x128xi32>
    %cst_25 = arith.constant 0.000000e+00 : f32
    %32 = vector.broadcast %cst_25 : f32 to vector<2x128xf32>
    %33 = arith.select %31, %27, %32 : vector<2x128xi1>, vector<2x128xf32>
    %34 = arith.addf %24, %33 : vector<2x128xf32>
    %c0_26 = arith.constant 0 : index
    %c2_27 = arith.constant 2 : index
    %c0_28 = arith.constant 0 : index
    %c0_29 = arith.constant 0 : index
    %35 = vector.load %arg2[%c0_26, %c2_27, %c0_28, %c0_29] : memref<1x4x2x128xf32, #tpu.memory_space<vmem>>, vector<1x1x2x128xf32>
    %36 = vector.shape_cast %35 : vector<1x1x2x128xf32> to vector<2x128xf32>
    %37 = arith.subf %36, %12 : vector<2x128xf32>
    %38 = math.exp %37 : vector<2x128xf32>
    %39 = arith.addf %29, %38 : vector<2x128xf32>
    %c2_i32 = arith.constant 2 : i32
    %40 = vector.broadcast %c2_i32 : i32 to vector<2x128xi32>
    %41 = arith.cmpi eq, %1, %40 : vector<2x128xi32>
    %cst_30 = arith.constant 0.000000e+00 : f32
    %42 = vector.broadcast %cst_30 : f32 to vector<2x128xf32>
    %43 = arith.select %41, %37, %42 : vector<2x128xi1>, vector<2x128xf32>
    %44 = arith.addf %34, %43 : vector<2x128xf32>
    %c0_31 = arith.constant 0 : index
    %c3_32 = arith.constant 3 : index
    %c0_33 = arith.constant 0 : index
    %c0_34 = arith.constant 0 : index
    %45 = vector.load %arg2[%c0_31, %c3_32, %c0_33, %c0_34] : memref<1x4x2x128xf32, #tpu.memory_space<vmem>>, vector<1x1x2x128xf32>
    %46 = vector.shape_cast %45 : vector<1x1x2x128xf32> to vector<2x128xf32>
    %47 = arith.subf %46, %12 : vector<2x128xf32>
    %48 = math.exp %47 : vector<2x128xf32>
    %49 = arith.addf %39, %48 : vector<2x128xf32>
    %c3_i32 = arith.constant 3 : i32
    %50 = vector.broadcast %c3_i32 : i32 to vector<2x128xi32>
    %51 = arith.cmpi eq, %1, %50 : vector<2x128xi32>
    %cst_35 = arith.constant 0.000000e+00 : f32
    %52 = vector.broadcast %cst_35 : f32 to vector<2x128xf32>
    %53 = arith.select %51, %47, %52 : vector<2x128xi1>, vector<2x128xf32>
    %54 = arith.addf %44, %53 : vector<2x128xf32>
    %55 = math.log %49 : vector<2x128xf32>
    %56 = arith.subf %55, %54 : vector<2x128xf32>
    %c0_i32_36 = arith.constant 0 : i32
    %57 = vector.broadcast %c0_i32_36 : i32 to vector<2x128xi32>
    %58 = arith.cmpi sge, %1, %57 : vector<2x128xi32>
    %c4_i32 = arith.constant 4 : i32
    %59 = vector.broadcast %c4_i32 : i32 to vector<2x128xi32>
    %60 = arith.cmpi slt, %1, %59 : vector<2x128xi32>
    %61 = arith.andi %58, %60 : vector<2x128xi1>
    %cst_37 = arith.constant 0.000000e+00 : f32
    %62 = vector.broadcast %cst_37 : f32 to vector<2x128xf32>
    %63 = arith.select %61, %56, %62 : vector<2x128xi1>, vector<2x128xf32>
    %cst_38 = arith.constant dense<0.000000e+00> : vector<128xf32>
    %64 = vector.multi_reduction <add>, %63, %cst_38 [0] : vector<2x128xf32> to vector<128xf32>
    %65 = vector.shape_cast %64 : vector<128xf32> to vector<1x128xf32>
    %66 = arith.extui %61 : vector<2x128xi1> to vector<2x128xi32>
    %67 = arith.sitofp %66 : vector<2x128xi32> to vector<2x128xf32>
    %cst_39 = arith.constant dense<0.000000e+00> : vector<128xf32>
    %68 = vector.multi_reduction <add>, %67, %cst_39 [0] : vector<2x128xf32> to vector<128xf32>
    %69 = vector.shape_cast %68 : vector<128xf32> to vector<1x128xf32>
    %70 = tpu.concatenate %65, %69 in 0 : vector<1x128xf32>, vector<1x128xf32> -> vector<2x128xf32>
    %71 = vector.shape_cast %70 : vector<2x128xf32> to vector<1x1x2x128xf32>
    %c0_40 = arith.constant 0 : index
    %c0_41 = arith.constant 0 : index
    %c0_42 = arith.constant 0 : index
    %c0_43 = arith.constant 0 : index
    %72 = vector.load %arg4[%c0_40, %c0_41, %c0_42, %c0_43] : memref<1x1x2x128xf32, #tpu.memory_space<vmem>>, vector<1x1x2x128xf32>
    tpu.vector_store %arg4[%c0_40, %c0_41, %c0_42, %c0_43], %71 {strides = array<i32>} : memref<1x1x2x128xf32, #tpu.memory_space<vmem>>, vector<1x1x2x128xf32>,
    return
  }
  func.func @transform_0(%arg0: i32, %arg1: i32) -> (i32, i32, i32, i32) {
    %c0_i32 = arith.constant 0 : i32
    %c0_i32_0 = arith.constant 0 : i32
    %c0_i32_1 = arith.constant 0 : i32
    return %arg0, %c0_i32, %arg1, %c0_i32_0 : i32, i32, i32, i32
  }
  func.func @transform_1(%arg0: i32, %arg1: i32) -> (i32, i32, i32) {
    %c0_i32 = arith.constant 0 : i32
    %c0_i32_0 = arith.constant 0 : i32
    return %arg0, %arg1, %c0_i32 : i32, i32, i32
  }
  func.func @transform_2(%arg0: i32, %arg1: i32) -> (i32, i32, i32, i32) {
    %c0_i32 = arith.constant 0 : i32
    %c0_i32_0 = arith.constant 0 : i32
    %c0_i32_1 = arith.constant 0 : i32
    return %arg0, %arg1, %c0_i32, %c0_i32_0 : i32, i32, i32, i32
  }
}

</mosaic_0001>

<bundles_post_ra>
// kernel: nll_ce_loss.1
= control target key start
LH: loop header
LB: loop body
LE: loop exit
PB: predicated region body
PF: predicated region fallthrough
CT: control target
= control target key end

     0   :  { %s450_s9 = smov 0   ;;  %s452_s10 = smov 0   ;;  %s504_s0 = inlined_call_operand.vmem [shape: f32[2,4,2,128], index: 0, kind: input, shape index: {}]   ;;  %s505_s1 = inlined_call_operand.vmem [shape: s32[2,2,128], index: 1, kind: input, shape index: {}]   ;;  %s506_s2 = inlined_call_operand.vmem [shape: f32[2,1,2,128], index: 2, kind: output, shape index: {}]  }
   0x1   :  { %s454_s11 = smov 0  }
   0x2 LB: > { %s24_s12 = sadd.s32 1, %s428_s10  ;;  %p363_p0 = scmp.ge.s32.totalorder %s432_s11, 1  ;;  %s432_s11 = sphi %s454_s11, %s12_s11   ;;  %s428_s10 = sphi %s452_s10, %s510_s10   ;;  %s424_s9 = sphi %s450_s9, %s509_s9  }
   0x3   : > { %p26_p1 = scmp.ge.s32.totalorder %s24_s12, 2  ;;  %p145_p2 = scmp.lt.s32.totalorder %s432_s11, 3 }
   0x5   : > { %s512_s12 = smov (%p26_p1, %s24_s12), 0  ;;  %p146_p3 = pnand %p363_p0, %p145_p2 }
   0x6   : > { %p179_p4 = scmp.lt.s32.totalorder (!%p146_p3), %s424_s9, 1  ;;  %vm247_vm6 = vcmask (!%p146_p3), 1041408   ;;  %v434_v26 = vmov (!%p146_p3), 0.0   ;;  %vm264_vm8 = vcmask (!%p146_p3), 1040384  }
   0x7   : > { %149 = sbr.rel (%p146_p3) target bundleno = 77 (0x4d), region = 28 }
   0xe   : > { %s514_s9 = smov (!%p179_p4, %s424_s9), 1 }
   0xf   : > { %s374_s13 = sshll.u32 %s514_s9, 3  ;;  %s366_s17 = sshll.u32 %s514_s9, 1 }
  0x10   : > { %s186_s16 = scalar_lea.vmem %s504_s0, %s374_s13  ;;  %s193_s20 = scalar_lea.vmem %s505_s1, %s366_s17 }
  0x11   : > { %v202_v0 = vld [vmem:[%s186_s16] sm:$0x3]  ;;  %v368_v1 = vld [vmem:[%s186_s16 + $0x2] sm:$0x3]  ;;  %v369_v3 = vld [vmem:[%s186_s16 + $0x4] sm:$0x3]  ;;  %s200_s23 = scalar_lea.vmem %s506_s2, %s366_s17 }
  0x12   : > { %v205_v2 = vmax.f32 %v202_v0, %v368_v1  ;;  %v370_v4 = vld [vmem:[%s186_s16 + $0x6] sm:$0x3]  ;;  %v201_v16 = vld [vmem:[%s193_s20] sm:$0x3] }
  0x13   : > { %vm243_vm0 = vcmp.ge.s32.totalorder %v201_v16, 0  ;;  %vm244_vm1 = vcmp.lt.s32.totalorder %v201_v16, 4  ;;  %vm216_vm2 = vcmp.eq.s32.totalorder %v201_v16, 0  ;;  %vm223_vm3 = vcmp.eq.s32.totalorder %v201_v16, 1 }
  0x14   : > { %v208_v5 = vmax.f32 %v205_v2, %v369_v3  ;;  %vm480_vm4 = vmand %vm243_vm0, %vm244_vm1  ;;  %vm230_vm5 = vcmp.eq.s32.totalorder %v201_v16, 2  ;;  %vm237_vm7 = vcmp.eq.s32.totalorder %v201_v16, 3 }
  0x15   : > { %v371_v27 = vsel %vm480_vm4, 1.0, %v434_v26 }
  0x16   : > { %v211_v6 = vmax.f32 %v208_v5, %v370_v4  ;;  %v257_v30 = vsel %vm247_vm6, %v371_v27, 0.0 }
  0x17   : > { %v258_v32 = vrot.slane %v257_v30, 4 }
  0x18   : > { %v212_v7 = vsub.f32 %v202_v0, %v211_v6  ;;  %v219_v8 = vsub.f32 %v368_v1, %v211_v6  ;;  %v226_v9 = vsub.f32 %v369_v3, %v211_v6  ;;  %v233_v10 = vsub.f32 %v370_v4, %v211_v6 }
  0x19   : > { %v259_v35 = vadd.f32 %v258_v32, %v257_v30 }
  0x1a   : > { %v213_v11 = vmul.f32 1.442695, %v212_v7  ;;  %v220_v12 = vmul.f32 1.442695, %v219_v8  ;;  %v227_v13 = vmul.f32 1.442695, %v226_v9 }
  0x1b   : > { %v234_v14 = vmul.f32 1.442695, %v233_v10  ;;  %v217_v23 = vsel %vm216_vm2, %v212_v7, 0.0  ;;  %v224_v24 = vsel %vm223_vm3, %v219_v8, 0.0  ;;  %v231_v29 = vsel %vm230_vm5, %v226_v9, 0.0 }
  0x1c   : > { %400 = vpow2.f32 %v213_v11  ;;  %v225_v28 = vadd.f32 %v224_v24, %v217_v23  ;;  %v238_v33 = vsel %vm237_vm7, %v233_v10, 0.0  ;;  %v260_v39 = vrot.slane %v259_v35, 2 }
  0x1d   : > { %402 = vpow2.f32 %v220_v12 }
  0x1e   : > { %404 = vpow2.f32 %v227_v13  ;;  %v232_v31 = vadd.f32 %v231_v29, %v225_v28  ;;  %v261_v43 = vadd.f32 %v260_v39, %v259_v35 }
  0x1f   : > { %406 = vpow2.f32 %v234_v14 }
  0x20   : > { %v239_v34 = vadd.f32 %v238_v33, %v232_v31  ;;  %v262_v46 = vrot.slane %v261_v43, 1 }
  0x22   : > { %v263_v49 = vadd.f32 %v262_v46, %v261_v43 }
  0x26   : > { %v401_v15 = vpop.eup %400 }
  0x27   : > { %v403_v17 = vpop.eup %402 }
  0x28   : > { %v405_v18 = vpop.eup %404  ;;  %v222_v19 = vadd.f32 %v403_v17, %v401_v15 }
  0x29   : > { %v407_v20 = vpop.eup %406 }
  0x2a   : > { %v229_v21 = vadd.f32 %v405_v18, %v222_v19 }
  0x2c   : > { %v236_v25 = vadd.f32 %v407_v20, %v229_v21 }
  0x2e   : > { %408 = vlog2.f32 %v236_v25 }
  0x38   : > { %v409_v36 = vpop.eup %408 }
  0x39   : > { %v241_v37 = vmul.f32 0.6931472, %v409_v36 }
  0x3b   : > { %v242_v38 = vsub.f32 %v241_v37, %v239_v34 }
  0x3d   : > { %v246_v40 = vsel %vm480_vm4, %v242_v38, 0.0 }
  0x3e   : > { %v248_v41 = vsel %vm247_vm6, %v246_v40, 0.0 }
  0x3f   : > { %v249_v42 = vrot.slane %v248_v41, 4 }
  0x41   : > { %v250_v44 = vadd.f32 %v249_v42, %v248_v41 }
  0x43   : > { %v251_v45 = vrot.slane %v250_v44, 2 }
  0x45   : > { %v252_v47 = vadd.f32 %v251_v45, %v250_v44 }
  0x47   : > { %v253_v48 = vrot.slane %v252_v47, 1 }
  0x49   : > { %v254_v50 = vadd.f32 %v253_v48, %v252_v47 }
  0x4b   : > { %v265_v51 = vsel %vm264_vm8, %v254_v50, %v263_v49 }
  0x4c   : > { %266 = vst [vmem:[%s200_s23] sm:$0x3] %v265_v51 }
  0x4d PF: > { %s12_s11 = sadd.s32 1, %s432_s11   ;;  %s509_s9 = smov %s428_s10 }
  0x4e   : > { %p9_p5 = scmp.ge.s32.totalorder %s12_s11, 4   ;;  %s510_s10 = smov %s512_s12 }
  0x50   :  { %11 = sbr.rel (!%p9_p5) target bundleno = 2 (0x2), region = 64 }

</bundles_post_ra>
